<compile_context>
chip_gen: v7x
topology: tpu7x:2x2x1
jax: 0.10.0
libtpu: 0.0.40
codegen_flags: <defaults>
</compile_context>

<pallas_src>
import functools

import jax
import jax.numpy as jnp
from jax.experimental import pallas as pl
from jax.experimental.pallas import tpu as pltpu


def _focal_loss_kernel(logits_ref, targets_ref, out_ref, *,
                       alpha, gamma, n_valid, tile_n):
    pid = pl.program_id(0)

    logits = logits_ref[...].astype(jnp.float32)   # (C, TN)  classes x samples
    targets = targets_ref[...]                     # (1, TN)  int32 class ids

    c, t = logits.shape

    # --- cross_entropy(inputs, targets, reduction='none'), lane-dense -------
    # log-sum-exp over the class (sublane) axis, numerically stable.
    m = jnp.max(logits, axis=0, keepdims=True)                         # (1, TN)
    shifted = logits - m                                               # (C, TN)
    e = jnp.exp(shifted)                                               # (C, TN)
    sumexp = jnp.sum(e, axis=0, keepdims=True)                         # (1, TN)
    lse = jnp.log(sumexp)                                              # (1, TN)

    # Target selection via masked sums over the class axis (no gather on TPU,
    # no one-hot astype+multiply).
    class_ids = jax.lax.broadcasted_iota(jnp.int32, (c, t), 0)         # (C, TN)
    is_tgt = class_ids == targets                                      # (C, TN)
    tgt_shifted = jnp.sum(jnp.where(is_tgt, shifted, 0.0),
                          axis=0, keepdims=True)                       # (1, TN)
    tgt_exp = jnp.sum(jnp.where(is_tgt, e, 0.0),
                      axis=0, keepdims=True)                           # (1, TN)

    bce = lse - tgt_shifted               # = -log_softmax[target]     # (1, TN)
    # pt = exp(-bce), but reuse exp(shifted) instead of another EUP exp.
    pt = tgt_exp / sumexp                                              # (1, TN)

    # --- focal re-weighting --------------------------------------------------
    u = jnp.maximum(1.0 - pt, 0.0)
    if float(gamma) == 2.0:
        w = u * u                          # explicit square: VPU mul, no pow
    else:
        w = u ** jnp.float32(gamma)
    f_loss = alpha * w * bce                                           # (1, TN)

    # --- mask padded / out-of-bounds samples in the last tile ---------------
    # MUST happen before the sum: tail lanes of a non-dividing last block hold
    # undefined data (possibly Inf/NaN); per-lane math keeps it in its lane,
    # and this where() zeroes it before any cross-lane reduction.
    lane_ids = jax.lax.broadcasted_iota(jnp.int32, (1, t), 1)          # (1, TN)
    valid = (pid * tile_n + lane_ids) < n_valid
    f_loss = jnp.where(valid, f_loss, 0.0)

    # --- per-tile partial sum, written as a full-width (1,128) block ---------
    partial = jnp.sum(f_loss, keepdims=True)                           # (1, 1)
    lane128 = jax.lax.broadcasted_iota(jnp.int32, (1, 128), 1)
    out_ref[...] = jnp.where(lane128 == 0, partial, 0.0)               # (1, 128)


def _vmem_capacity_bytes():
    """Per-chip VMEM capacity (generation-aware); conservative fallback."""
    try:
        info = pltpu.get_tpu_info()
        cap = getattr(info, "vmem_capacity_bytes", None)
        if cap:
            return int(cap)
    except Exception:
        pass
    return 64 * 1024 * 1024   # v7x per-TensorCore VMEM (smallest generation)


def focal_loss(logits, targets, *, alpha=0.75, gamma=2.0,
               transfer_dtype=None, target_tile_bytes=2 * 1024 * 1024):
    """logits: (N, C) float (f32 or bf16); targets: (N,) int class indices.

    Returns the scalar mean focal loss (matches the PyTorch FocalLoss.forward).
    `transfer_dtype=jnp.bfloat16` halves HBM traffic for this bandwidth-bound
    kernel (math is still done in f32 inside the kernel).
    """
    n, c = logits.shape

    if transfer_dtype is not None:
        logits = logits.astype(transfer_dtype)   # fused with the transpose

    # Lane-dense layout: samples along the 128-lane axis.
    # TODO(synk): emit logits (C, N)-major upstream to drop this extra pass.
    logits_t = jnp.transpose(logits)                       # (C, N)
    targets2d = targets.astype(jnp.int32).reshape(1, n)    # (1, N)

    itemsize = jnp.dtype(logits_t.dtype).itemsize

    # --- tile sizing: big enough to amortize per-step overhead, small enough
    # --- to fit the real per-chip VMEM, and keep >= ~8 grid steps if N allows.
    vmem_cap = _vmem_capacity_bytes()
    vmem_budget = int(vmem_cap * 0.55)

    # Per-lane VMEM cost: double-buffered inputs + ~6x f32 (C, TN) temporaries.
    bytes_per_lane = 2 * (c * itemsize + 4) + 6 * c * 4
    tn_vmem_cap = max(128, vmem_budget // bytes_per_lane)

    tn_target = max(128, target_tile_bytes // (c * itemsize))
    tn_for_grid = max(128, (n + 7) // 8)     # >= ~8 tiles -> v7x 2-TC sharding

    tn = int(min(tn_target, tn_vmem_cap, tn_for_grid))
    tn = max(128, (tn // 128) * 128)
    grid = max(1, (n + tn - 1) // tn)        # non-dividing last block is fine

    kernel = functools.partial(
        _focal_loss_kernel,
        alpha=float(alpha), gamma=float(gamma), n_valid=n, tile_n=tn)

    per_step_bytes = tn * bytes_per_lane + 64 * 1024
    vmem_limit = int(min(vmem_cap - 8 * 1024 * 1024,
                         max(per_step_bytes + 4 * 1024 * 1024,
                             16 * 1024 * 1024)))

    partials = pl.pallas_call(
        kernel,
        out_shape=jax.ShapeDtypeStruct((1, grid * 128), jnp.float32),
        grid=(grid,),
        in_specs=[
            pl.BlockSpec((c, tn), lambda i: (0, i)),   # logits tile (C, TN)
            pl.BlockSpec((1, tn), lambda i: (0, i)),   # targets tile (1, TN)
        ],
        out_specs=pl.BlockSpec((1, 128), lambda i: (0, i)),
        compiler_params=pltpu.CompilerParams(
            dimension_semantics=("parallel",),         # shard tiles across TCs
            vmem_limit_bytes=vmem_limit,
        ),
    )(logits_t, targets2d)

    # Tiny final reduction in the wrapper; divide by the TRUE sample count.
    return jnp.sum(partials) / jnp.float32(n)


def _focal_loss_ref(logits, targets, alpha=0.75, gamma=2.0):
    # Pure-JAX reference mirroring torch.nn.functional.cross_entropy + focal.
    logits = logits.astype(jnp.float32)
    log_probs = jax.nn.log_softmax(logits, axis=-1)
    bce = -jnp.take_along_axis(log_probs, targets[:, None].astype(jnp.int32),
                               axis=-1)[:, 0]
    pt = jnp.exp(-bce)
    return jnp.mean(alpha * (1.0 - pt) ** gamma * bce)


if __name__ == "__main__":
    key = jax.random.PRNGKey(0)
    k_logits, k_targets, k_logits2, k_targets2 = jax.random.split(key, 4)

    # Small case (single tile, masked tail lanes of a non-dividing block).
    N, C = 16, 8
    logits = jax.random.normal(k_logits, (N, C), dtype=jnp.float32)
    targets = jax.random.randint(k_targets, (N,), 0, C, dtype=jnp.int32)
    loss = jax.block_until_ready(focal_loss(logits, targets, alpha=0.75, gamma=2.0))
    ref = _focal_loss_ref(logits, targets, alpha=0.75, gamma=2.0)
    assert jnp.allclose(loss, ref, rtol=1e-5, atol=1e-6), (loss, ref)

    # Multi-tile case (exercises the grid, partial sums and last-tile masking
    # with N not a multiple of the 128-lane tile).
    N2, C2 = 1000, 8
    logits2 = jax.random.normal(k_logits2, (N2, C2), dtype=jnp.float32)
    targets2 = jax.random.randint(k_targets2, (N2,), 0, C2, dtype=jnp.int32)
    loss2 = jax.block_until_ready(
        focal_loss(logits2, targets2, alpha=0.75, gamma=2.0))
    ref2 = _focal_loss_ref(logits2, targets2, alpha=0.75, gamma=2.0)
    assert jnp.allclose(loss2, ref2, rtol=1e-5, atol=1e-6), (loss2, ref2)

    # bf16 transfer path (halves HBM traffic); looser tolerance vs f32 ref.
    loss3 = jax.block_until_ready(
        focal_loss(logits2, targets2, alpha=0.75, gamma=2.0,
                   transfer_dtype=jnp.bfloat16))
    assert jnp.allclose(loss3, ref2, rtol=3e-2, atol=1e-3), (loss3, ref2)

    print("KERNEL_OK")
</pallas_src>

<mosaic_0001>
module attributes {stable_mosaic.version = 11 : i64} {
  func.func @_focal_loss_kernel(%arg0: i32, %arg1: memref<8x128xf32, #tpu.memory_space<vmem>>, %arg2: memref<1x128xi32, #tpu.memory_space<vmem>>, %arg3: memref<1x128xf32, #tpu.memory_space<vmem>>) attributes {dimension_semantics = [#tpu.dimension_semantics<parallel>], iteration_bounds = array<i64: 1>, scalar_prefetch = 0 : i64, scratch_operands = 0 : i64, tpu.core_type = #tpu.core_type<tc>, window_params = [{transform_indices = @transform_0, window_bounds = array<i64: 8, 128>}, {transform_indices = @transform_1, window_bounds = array<i64: 1, 128>}, {transform_indices = @transform_2, window_bounds = array<i64: 1, 128>}]} {
    %c0 = arith.constant 0 : index
    %c0_0 = arith.constant 0 : index
    %0 = vector.load %arg1[%c0, %c0_0] : memref<8x128xf32, #tpu.memory_space<vmem>>, vector<8x128xf32>
    %c0_1 = arith.constant 0 : index
    %c0_2 = arith.constant 0 : index
    %1 = vector.load %arg2[%c0_1, %c0_2] : memref<1x128xi32, #tpu.memory_space<vmem>>, vector<1x128xi32>
    %cst = arith.constant dense<0xFF800000> : vector<128xf32>
    %2 = vector.multi_reduction <maximumf>, %0, %cst [0] : vector<8x128xf32> to vector<128xf32>
    %3 = vector.shape_cast %2 : vector<128xf32> to vector<1x128xf32>
    %4 = vector.broadcast %3 : vector<1x128xf32> to vector<8x128xf32>
    %5 = arith.subf %0, %4 : vector<8x128xf32>
    %6 = math.exp %5 : vector<8x128xf32>
    %cst_3 = arith.constant dense<0.000000e+00> : vector<128xf32>
    %7 = vector.multi_reduction <add>, %6, %cst_3 [0] : vector<8x128xf32> to vector<128xf32>
    %8 = vector.shape_cast %7 : vector<128xf32> to vector<1x128xf32>
    %9 = math.log %8 : vector<1x128xf32>
    %10 = tpu.iota {dimensions = array<i32: 0>} : vector<8x128xi32>
    %11 = vector.broadcast %1 : vector<1x128xi32> to vector<8x128xi32>
    %12 = arith.cmpi eq, %10, %11 : vector<8x128xi32>
    %cst_4 = arith.constant 0.000000e+00 : f32
    %13 = vector.broadcast %cst_4 : f32 to vector<8x128xf32>
    %14 = arith.select %12, %5, %13 : vector<8x128xi1>, vector<8x128xf32>
    %cst_5 = arith.constant dense<0.000000e+00> : vector<128xf32>
    %15 = vector.multi_reduction <add>, %14, %cst_5 [0] : vector<8x128xf32> to vector<128xf32>
    %16 = vector.shape_cast %15 : vector<128xf32> to vector<1x128xf32>
    %cst_6 = arith.constant 0.000000e+00 : f32
    %17 = vector.broadcast %cst_6 : f32 to vector<8x128xf32>
    %18 = arith.select %12, %6, %17 : vector<8x128xi1>, vector<8x128xf32>
    %cst_7 = arith.constant dense<0.000000e+00> : vector<128xf32>
    %19 = vector.multi_reduction <add>, %18, %cst_7 [0] : vector<8x128xf32> to vector<128xf32>
    %20 = vector.shape_cast %19 : vector<128xf32> to vector<1x128xf32>
    %21 = arith.subf %9, %16 : vector<1x128xf32>
    %22 = arith.divf %20, %8 : vector<1x128xf32>
    %cst_8 = arith.constant 1.000000e+00 : f32
    %23 = vector.broadcast %cst_8 : f32 to vector<1x128xf32>
    %24 = arith.subf %23, %22 : vector<1x128xf32>
    %cst_9 = arith.constant 0.000000e+00 : f32
    %25 = vector.broadcast %cst_9 : f32 to vector<1x128xf32>
    %26 = arith.maximumf %24, %25 : vector<1x128xf32>
    %27 = arith.mulf %26, %26 : vector<1x128xf32>
    %cst_10 = arith.constant 7.500000e-01 : f32
    %28 = vector.broadcast %cst_10 : f32 to vector<1x128xf32>
    %29 = arith.mulf %28, %27 : vector<1x128xf32>
    %30 = arith.mulf %29, %21 : vector<1x128xf32>
    %31 = tpu.iota {dimensions = array<i32: 1>} : vector<1x128xi32>
    %c128_i32 = arith.constant 128 : i32
    %32 = arith.muli %arg0, %c128_i32 : i32
    %33 = vector.broadcast %32 : i32 to vector<1x128xi32>
    %34 = arith.addi %33, %31 : vector<1x128xi32>
    %c16_i32 = arith.constant 16 : i32
    %35 = vector.broadcast %c16_i32 : i32 to vector<1x128xi32>
    %36 = arith.cmpi slt, %34, %35 : vector<1x128xi32>
    %cst_11 = arith.constant 0.000000e+00 : f32
    %37 = vector.broadcast %cst_11 : f32 to vector<1x128xf32>
    %38 = arith.select %36, %30, %37 : vector<1x128xi1>, vector<1x128xf32>
    %39 = vector.shape_cast %38 : vector<1x128xf32> to vector<1x1x128xf32>
    %cst_12 = arith.constant dense<0.000000e+00> : vector<1xf32>
    %40 = vector.multi_reduction <add>, %39, %cst_12 [1, 2] : vector<1x1x128xf32> to vector<1xf32>
    %41 = vector.shape_cast %40 : vector<1xf32> to vector<1x1x1xf32>
    %42 = vector.extract %41[0, 0, 0] : f32 from vector<1x1x1xf32>
    %43 = vector.broadcast %42 : f32 to vector<1x1xf32>
    %44 = tpu.iota {dimensions = array<i32: 1>} : vector<1x128xi32>
    %c0_i32 = arith.constant 0 : i32
    %45 = vector.broadcast %c0_i32 : i32 to vector<1x128xi32>
    %46 = arith.cmpi eq, %44, %45 : vector<1x128xi32>
    %cst_13 = arith.constant 0.000000e+00 : f32
    %47 = vector.shape_cast %43 : vector<1x1xf32> to vector<1x1xf32>
    %48 = vector.broadcast %47 : vector<1x1xf32> to vector<1x128xf32>
    %49 = vector.broadcast %cst_13 : f32 to vector<1x128xf32>
    %50 = arith.select %46, %48, %49 : vector<1x128xi1>, vector<1x128xf32>
    %c0_14 = arith.constant 0 : index
    %c0_15 = arith.constant 0 : index
    %51 = vector.load %arg3[%c0_14, %c0_15] : memref<1x128xf32, #tpu.memory_space<vmem>>, vector<1x128xf32>
    tpu.vector_store %arg3[%c0_14, %c0_15], %50 {strides = array<i32>} : memref<1x128xf32, #tpu.memory_space<vmem>>, vector<1x128xf32>,
    return
  }
  func.func @transform_0(%arg0: i32) -> (i32, i32) {
    %c0_i32 = arith.constant 0 : i32
    %c0_i32_0 = arith.constant 0 : i32
    return %c0_i32, %arg0 : i32, i32
  }
  func.func @transform_1(%arg0: i32) -> (i32, i32) {
    %c0_i32 = arith.constant 0 : i32
    %c0_i32_0 = arith.constant 0 : i32
    return %c0_i32, %arg0 : i32, i32
  }
  func.func @transform_2(%arg0: i32) -> (i32, i32) {
    %c0_i32 = arith.constant 0 : i32
    %c0_i32_0 = arith.constant 0 : i32
    return %c0_i32, %arg0 : i32, i32
  }
}

</mosaic_0001>

<bundles_post_ra>
// kernel: tpu_custom_call.1
= control target key start
LH: loop header
LB: loop body
LE: loop exit
PB: predicated region body
PF: predicated region fallthrough
CT: control target
= control target key end

     0   :  { %7 = vsyncpa [#allocation3], 0  ;;  %s212_s0 = inlined_call_operand.hbm [shape: f32[8,16], index: 0, kind: input, shape index: {}]   ;;  %s213_s1 = inlined_call_operand.vmem [shape: s32[1,16], index: 1, kind: input, shape index: {}]   ;;  %s214_s2 = inlined_call_operand.hbm [shape: f32[1,128], index: 2, kind: output, shape index: {}]  }
   0x1   :  { %8 = vsyncpa [#allocation4], 0  ;;  %s168_s9 = smov [#allocation2]   ;;  %s120_s13 = scalar_lea.hbm %s212_s0, 128 }
   0x2   :  { %s15_s10 = sshll.u32 %s168_s9, 4  ;;  %p121_p0 = scmp.ne.s32.totalorder %s212_s0, %s120_s13  ;;  %s16_s10 = int_to_ptr.vmem [resolvable:$true] %s15_s10 }
   0x3   :  { %p124_p1 = scmp.lt.u32.totalorder %s120_s13, %s212_s0 }
   0x5   :  { %p126_p2 = pnand %p124_p1, %p121_p0 }
   0x7   :  { %129 = shalt.err (!%p126_p2)
}
   0x8   :  { %s130_s18 = scalar_lea.vmem %s16_s10, 128  ;;  %p135_p4 = scmp.lt.s32.totalorder %s16_s10, %s16_s10 }
   0x9   :  { %p131_p3 = scmp.ne.s32.totalorder %s16_s10, %s130_s18  ;;  %p136_p5 = scmp.lt.s32.totalorder %s130_s18, %s130_s18 }
   0xb   :  { %p137_p6 = por %p136_p5, %p135_p4 }
   0xd   :  { %p138_p7 = pnand %p137_p6, %p131_p3 }
   0xf   :  { %141 = shalt.err (!%p138_p7)
}
  0x10   :  { %18 = dma.hbm_to_vmem [thread:$0]  %s212_s0, 128, %s16_s10, [#allocation3]  }
  0x11   :  { %164 = dma.done.wait [#allocation3], 128  }
  0x12   :  { %165 = vsyncadd [#allocation3], 4294967168  ;;  %v24_v0 = vld [vmem:[#allocation2] sm:$0xff]  ;;  %v43_v9 = vlaneseq  ;;  %vm79_vm2 = vcmask 1040384   ;;  %s169_s0 = smov [#allocation5]  }
  0x13   :  { %v26_v1 = vrot.slane %v24_v0, 4  ;;  %v109_v11 = vld [vmem:[%s213_s1] ss:$0 sm:$0xff]  ;;  %s100_s1 = sshll.u32 %s169_s0, 4  ;;  %s101_s1 = int_to_ptr.vmem [resolvable:$true] %s100_s1 }
  0x14   :  { %v44_v10 = vshrl.u32 %v43_v9, 7  ;;  %v73_v39 = vand.u32 127, %v43_v9  ;;  %s142_s24 = scalar_lea.vmem %s101_s1, 16  ;;  %s146_s25 = scalar_lea.vmem %s101_s1, 32 }
  0x15   :  { %v27_v2 = vmax.f32 %v24_v0, %v26_v1  ;;  %p143_p8 = scmp.ne.s32.totalorder %s101_s1, %s142_s24  ;;  %p147_p9 = scmp.lt.s32.totalorder %s101_s1, %s101_s1 }
  0x16   :  { %vm49_vm0 = vcmp.eq.s32.totalorder %v44_v10, %v109_v11  ;;  %vm77_vm1 = vcmp.lt.s32.totalorder %v73_v39, 16  ;;  %vm90_vm3 = vcmp.eq.s32.totalorder %v73_v39, 0  ;;  %p148_p10 = scmp.lt.s32.totalorder %s146_s25, %s142_s24 }
  0x17   :  { %v28_v3 = vrot.slane %v27_v2, 2 }
  0x18   :  { %p149_p11 = por %p148_p10, %p147_p9 }
  0x19   :  { %v29_v4 = vmax.f32 %v27_v2, %v28_v3 }
  0x1a   :  { %p150_p12 = pnand %p149_p11, %p143_p8 }
  0x1b   :  { %v30_v5 = vrot.slane %v29_v4, 1 }
  0x1d   :  { %v31_v6 = vmax.f32 %v29_v4, %v30_v5 }
  0x1f   :  { %v32_v7 = vsub.f32 %v24_v0, %v31_v6 }
  0x21   :  { %v33_v8 = vmul.f32 1.442695, %v32_v7  ;;  %v50_v17 = vsel %vm49_vm0, %v32_v7, 0.0 }
  0x22   :  { %v51_v21 = vrot.slane %v50_v17, 4 }
  0x23   :  { %114 = vpow2.f32 %v33_v8 }
  0x24   :  { %v52_v25 = vadd.f32 %v51_v21, %v50_v17 }
  0x26   :  { %v53_v27 = vrot.slane %v52_v25, 2 }
  0x28   :  { %v54_v29 = vadd.f32 %v53_v27, %v52_v25 }
  0x2a   :  { %v55_v32 = vrot.slane %v54_v29, 1 }
  0x2c   :  { %v56_v36 = vadd.f32 %v55_v32, %v54_v29 }
  0x2d   :  { %v115_v12 = vpop.eup %114 }
  0x2e   :  { %v35_v13 = vrot.slane %v115_v12, 4  ;;  %v57_v14 = vsel %vm49_vm0, %v115_v12, 0.0 }
  0x2f   :  { %v58_v15 = vrot.slane %v57_v14, 4 }
  0x30   :  { %v36_v16 = vadd.f32 %v115_v12, %v35_v13 }
  0x31   :  { %v59_v19 = vadd.f32 %v58_v15, %v57_v14 }
  0x32   :  { %v37_v18 = vrot.slane %v36_v16, 2 }
  0x33   :  { %v60_v23 = vrot.slane %v59_v19, 2 }
  0x34   :  { %v38_v20 = vadd.f32 %v37_v18, %v36_v16 }
  0x35   :  { %v61_v26 = vadd.f32 %v60_v23, %v59_v19 }
  0x36   :  { %v39_v22 = vrot.slane %v38_v20, 1 }
  0x37   :  { %v62_v28 = vrot.slane %v61_v26, 1 }
  0x38   :  { %v40_v24 = vadd.f32 %v39_v22, %v38_v20 }
  0x39   :  { %v63_v30 = vadd.f32 %v62_v28, %v61_v26 }
  0x3a   :  { %116 = vlog2.f32 %v40_v24 }
  0x3b   :  { %118 = vrcp.f32 %v40_v24 }
  0x44   :  { %v117_v31 = vpop.eup %116 }
  0x45   :  { %v119_v33 = vpop.eup %118  ;;  %v42_v35 = vmul.f32 0.6931472, %v117_v31 }
  0x46   :  { %v66_v34 = vmul.f32 %v119_v33, %v63_v30 }
  0x47   :  { %v64_v40 = vsub.f32 %v42_v35, %v56_v36 }
  0x48   :  { %v67_v37 = vsub.f32 1.0, %v66_v34 }
  0x4a   :  { %v68_v38 = vmax.f32 %v67_v37, 0.0 }
  0x4c   :  { %v69_v41 = vmul.f32 %v68_v38, %v68_v38 }
  0x4e   :  { %v70_v42 = vmul.f32 0.75, %v69_v41 }
  0x50   :  { %v71_v43 = vmul.f32 %v70_v42, %v64_v40 }
  0x52   :  { %v78_v44 = vsel %vm77_vm1, %v71_v43, 0.0 }
  0x53   :  { %v80_v45 = vsel %vm79_vm2, %v78_v44, 0.0 }
  0x54   :  { %81 = vadd.xlane.f32.xlu0 %v80_v45 }
  0xe1   :  { %v82_v46 = vpop.xlane.xlu0 %81 }
  0xe2   :  { %v83_v47 = vrot.slane %v82_v46, 4 }
  0xe4   :  { %v84_v48 = vadd.f32 %v83_v47, %v82_v46 }
  0xe6   :  { %v85_v49 = vrot.slane %v84_v48, 2 }
  0xe8   :  { %v86_v50 = vadd.f32 %v85_v49, %v84_v48 }
  0xea   :  { %v87_v51 = vrot.slane %v86_v50, 1 }
  0xec   :  { %v88_v52 = vadd.f32 %v87_v51, %v86_v50 }
  0xee   :  { %110 = vpush %v88_v52 }
 0x11f   :  { %s111_s23 = spop %110 }
 0x120   :  { %v91_v53 = vstv %s111_s23 }
 0x121   :  { %v92_v54 = vsel %vm90_vm3, %v91_v53, 0.0 }
 0x122   :  { %93 = vst [vmem:[#allocation5] sm:$0x1] %v92_v54 }
 0x123   :  { %153 = shalt.err (!%p150_p12)
}
 0x124   :  { %s154_s28 = scalar_lea.hbm %s214_s2, 16 }
 0x125   :  { %p155_p13 = scmp.ne.s32.totalorder %s214_s2, %s154_s28  ;;  %p158_p0 = scmp.lt.u32.totalorder %s154_s28, %s214_s2 }
 0x127   :  { %p160_p1 = pnand %p158_p0, %p155_p13 }
 0x129   :  { %163 = shalt.err (!%p160_p1)
}
 0x12a   :  { %103 = dma.vmem_to_hbm [thread:$0]  %s101_s1, 16, %s214_s2, [#allocation4]  }
 0x12b   :  { %166 = dma.done.wait [#allocation4], 16  }
 0x12c   :  { %167 = vsyncadd [#allocation4], 4294967280 }
 0x12d   :  { %107 = vsyncpa [#allocation3], 1 }
 0x12e   :  { %108 = vsyncpa [#allocation4], 1 }

</bundles_post_ra>
